<compile_context>
chip_gen: v6e
topology: v6e:2x2x1
jax: 0.10.0
libtpu: 0.0.40
codegen_flags: <defaults>
</compile_context>

<pallas_src>
import functools

import jax
import jax.numpy as jnp
from jax import lax
from jax.experimental import pallas as pl
from jax.experimental.pallas import tpu as pltpu


def _cdiv(a, b):
    return -(-a // b)


def _vmem_capacity_bytes():
    try:
        info = pltpu.get_tpu_info()
        cap = getattr(info, "vmem_capacity_bytes", None)
        if cap:
            return int(cap)
    except Exception:
        pass
    return 64 << 20   # conservative (v7x-sized) fallback


# ----------------------------- Pallas kernel --------------------------------
def _conv_bn_kernel(x_ref, h_ref, w_ref, scale_ref, shift_ref, o_ref, *, K, d):
    # x_ref:     (1, T_oh, Wimg, Cin)       bf16  current row tile of padded image
    # h_ref:     (1, 1, halo, Wimg, Cin)    bf16  (K-1)*d halo rows below the tile
    # w_ref:     (K*K*Cin, Cout)            bf16  im2col-ordered conv weight
    # scale_ref: (1, Cout)                  f32   gamma / sqrt(var + eps)
    # shift_ref: (1, Cout)                  f32   beta - mean * scale
    # o_ref:     (1, T_oh, OW, Cout)        f32
    _, T_oh, _, Cin = x_ref.shape
    _, _, OW, _ = o_ref.shape

    # Row window = tile + halo (one cheap leading-dim concat per grid step;
    # every padded input row is read from HBM exactly once).
    win = jnp.concatenate([x_ref[0], h_ref[0, 0]], axis=0)     # (T_oh+halo, Wimg, Cin)

    # In-VMEM im2col: K*K shifted slabs per tile (not per row), concatenated on
    # lanes -> (T_oh*OW, K*K*Cin) patch matrix.
    slabs = []
    for kh in range(K):
        for kw in range(K):
            slabs.append(win[kh * d: kh * d + T_oh, kw * d: kw * d + OW, :])
    patch = jnp.concatenate(slabs, axis=-1).reshape(T_oh * OW, K * Cin * K)

    # Single MXU matmul per tile: M = T_oh*OW, contraction = K*K*Cin.
    acc = jnp.dot(patch, w_ref[...], preferred_element_type=jnp.float32)

    # f32 BatchNorm epilogue; one tile-wide store (no per-row stores).
    y = acc * scale_ref[...] + shift_ref[...]
    o_ref[0] = y.reshape(T_oh, OW, -1).astype(o_ref.dtype)


# ----------------------------- wrapper ---------------------------------------
def basic_conv2d(x_nchw, weight, gamma, beta, running_mean, running_var,
                 *, stride=1, padding=0, dilation=1, eps=1e-5):
    """Forward of BasicConv2d: bn(conv(x)).  x: (N, Cin, H, W) -> (N, Cout, OH, OW)."""
    Cout, Cin, K, K2 = weight.shape
    assert K == K2
    N, Cin_x, H, W = x_nchw.shape
    assert Cin_x == Cin
    p_, d_, s = padding, dilation, stride

    # Inference-form BatchNorm: y = conv(x, w) * scale + shift (kept in the
    # f32 epilogue; weights stay un-scaled bf16 for accuracy).
    scale = gamma.astype(jnp.float32) / jnp.sqrt(running_var.astype(jnp.float32) + eps)
    shift = beta.astype(jnp.float32) - running_mean.astype(jnp.float32) * scale
    scale2 = scale.reshape(1, Cout)
    shift2 = shift.reshape(1, Cout)

    # Dense (stride=1) output geometry; stride>1 subsamples at the end.
    # TODO(synk): fold stride>1 into the index maps / slab strides instead of
    # computing the dense result and subsampling (unused by BasicConv2d here).
    OH1 = H + 2 * p_ - d_ * (K - 1)
    OW1 = W + 2 * p_ - d_ * (K - 1)
    assert OH1 >= 1 and OW1 >= 1, "kernel/dilation too large for input"

    halo = (K - 1) * d_
    halo_arr = max(halo, 1)            # avoid zero-sized arrays for K == 1
    Wimg = W + 2 * p_
    KKC = K * K * Cin

    # ---- row-tile size from a per-generation VMEM byte budget ---------------
    vmem_cap = _vmem_capacity_bytes()
    budget = int(vmem_cap * 0.70)

    def _step_bytes(t):
        act = 2 * t * Wimg * Cin * 2                     # x tile, double-buffered
        hal = 2 * halo_arr * Wimg * Cin * 2              # halo tile, double-buffered
        outb = 2 * t * OW1 * Cout * 4                    # output tile, double-buffered
        wgt = 2 * (KKC * Cout * 2) + 4 * (Cout * 4)      # weights + scale/shift (x2 buffers)
        tmp = ((t + halo_arr) * Wimg * Cin * 2           # window value
               + t * OW1 * (KKC * 2 + 2 * Cout * 4))     # patch + f32 result temps
        return act + hal + outb + wgt + tmp

    # Target >= ~1024 matmul M-rows per grid step, shrink until it fits VMEM.
    T_oh = max(1, min(OH1, _cdiv(1024, max(OW1, 1))))
    while T_oh > 1 and _step_bytes(T_oh) > budget:
        T_oh = max(1, T_oh // 2)
    n_t = _cdiv(OH1, T_oh)
    # Give both v7x TensorCores work when the grid would be a single step.
    if N * n_t < 2 and OH1 >= 2:
        T_oh = _cdiv(OH1, 2)
        n_t = _cdiv(OH1, T_oh)
    OHp = n_t * T_oh

    vmem_limit = int(min(max(_step_bytes(T_oh) + (8 << 20), 32 << 20),
                         vmem_cap - (4 << 20)))

    # ---- operands ------------------------------------------------------------
    # im2col-ordered weights, bf16: (Cout, Cin, K, K) -> (K*K*Cin, Cout).
    w2 = jnp.transpose(weight.astype(jnp.float32), (2, 3, 1, 0)).reshape(KKC, Cout)
    w2 = w2.astype(jnp.bfloat16)

    # Padded NHWC activation in bf16 (cast before the transpose: half the bytes).
    Himg = OHp + halo_arr
    x = jnp.transpose(x_nchw.astype(jnp.bfloat16), (0, 2, 3, 1))            # NHWC
    x = jnp.pad(x, ((0, 0), (p_, Himg - H - p_), (p_, p_), (0, 0)))         # (N, Himg, Wimg, Cin)

    # Halo rows per tile: the only duplicated activation bytes (halo rows/tile).
    row_idx = (jnp.arange(n_t)[:, None] + 1) * T_oh + jnp.arange(halo_arr)[None, :]
    halo_rows = x[:, row_idx]                                               # (N, n_t, halo, Wimg, Cin)

    out = pl.pallas_call(
        functools.partial(_conv_bn_kernel, K=K, d=d_),
        out_shape=jax.ShapeDtypeStruct((N, OHp, OW1, Cout), jnp.float32),
        grid_spec=pltpu.PrefetchScalarGridSpec(
            num_scalar_prefetch=0,
            grid=(N, n_t),
            in_specs=[
                pl.BlockSpec((1, T_oh, Wimg, Cin), lambda n, t: (n, t, 0, 0)),
                pl.BlockSpec((1, 1, halo_arr, Wimg, Cin), lambda n, t: (n, t, 0, 0, 0)),
                pl.BlockSpec((KKC, Cout), lambda n, t: (0, 0)),
                pl.BlockSpec((1, Cout), lambda n, t: (0, 0)),
                pl.BlockSpec((1, Cout), lambda n, t: (0, 0)),
            ],
            out_specs=pl.BlockSpec((1, T_oh, OW1, Cout), lambda n, t: (n, t, 0, 0)),
        ),
        compiler_params=pltpu.CompilerParams(
            dimension_semantics=("parallel", "parallel"),
            vmem_limit_bytes=vmem_limit),
    )(x, halo_rows, w2, scale2, shift2)

    out = out[:, :OH1]                            # drop padded output rows
    out = jnp.transpose(out, (0, 3, 1, 2))        # back to NCHW (module convention)
    if s > 1:
        out = out[:, :, ::s, ::s]
    return out


# ----------------------------- reference (pure JAX, f32) ----------------------
def _reference(x_nchw, weight, gamma, beta, mean, var, *, stride, padding, dilation, eps=1e-5):
    y = lax.conv_general_dilated(
        x_nchw, weight,
        window_strides=(stride, stride),
        padding=((padding, padding), (padding, padding)),
        rhs_dilation=(dilation, dilation),
        dimension_numbers=("NCHW", "OIHW", "NCHW"))
    s = (gamma / jnp.sqrt(var + eps)).reshape(1, -1, 1, 1)
    b = (beta - mean * gamma / jnp.sqrt(var + eps)).reshape(1, -1, 1, 1)
    return y * s + b


if __name__ == "__main__":
    key = jax.random.PRNGKey(0)
    k_x, k_w, k_g, k_b, k_m, k_v = jax.random.split(key, 6)

    # BasicConv2d(in_planes=4, out_planes=8, kernel_size=3, stride=1, padding=1)
    N, Cin, H, W = 2, 4, 16, 16
    Cout, K, stride, padding, dilation = 8, 3, 1, 1, 1

    x = jax.random.normal(k_x, (N, Cin, H, W), dtype=jnp.float32)
    weight = jax.random.normal(k_w, (Cout, Cin, K, K), dtype=jnp.float32) * 0.1
    gamma = jax.random.normal(k_g, (Cout,), dtype=jnp.float32) * 0.1 + 1.0
    beta = jax.random.normal(k_b, (Cout,), dtype=jnp.float32) * 0.1
    running_mean = jax.random.normal(k_m, (Cout,), dtype=jnp.float32) * 0.1
    running_var = jax.random.uniform(k_v, (Cout,), dtype=jnp.float32, minval=0.5, maxval=1.5)

    fwd = jax.jit(functools.partial(basic_conv2d, stride=stride,
                                    padding=padding, dilation=dilation))
    out = fwd(x, weight, gamma, beta, running_mean, running_var)
    out = jax.block_until_ready(out)

    ref = _reference(x, weight, gamma, beta, running_mean, running_var,
                     stride=stride, padding=padding, dilation=dilation)
    assert out.shape == (N, Cout, H, W), out.shape
    # bf16 MXU operands -> relaxed tolerance vs. the f32 reference.
    assert jnp.allclose(out, ref, atol=5e-2, rtol=5e-2), \
        float(jnp.max(jnp.abs(out - ref)))

    print("KERNEL_OK")
</pallas_src>

<mosaic_0001>
module attributes {stable_mosaic.version = 11 : i64} {
  func.func @_conv_bn_kernel(%arg0: i32, %arg1: i32, %arg2: memref<1x16x18x4xbf16, #tpu.memory_space<vmem>>, %arg3: memref<1x1x2x18x4xbf16, #tpu.memory_space<vmem>>, %arg4: memref<36x8xbf16, #tpu.memory_space<vmem>>, %arg5: memref<1x8xf32, #tpu.memory_space<vmem>>, %arg6: memref<1x8xf32, #tpu.memory_space<vmem>>, %arg7: memref<1x16x16x8xf32, #tpu.memory_space<vmem>>) attributes {dimension_semantics = [#tpu.dimension_semantics<parallel>, #tpu.dimension_semantics<parallel>], iteration_bounds = array<i64: 2, 1>, scalar_prefetch = 0 : i64, scratch_operands = 0 : i64, tpu.core_type = #tpu.core_type<tc>, window_params = [{transform_indices = @transform_0, window_bounds = array<i64: 1, 16, 18, 4>}, {transform_indices = @transform_1, window_bounds = array<i64: 1, 1, 2, 18, 4>}, {pipeline_mode = #tpu.pipeline_mode<synchronous>, transform_indices = @transform_2, window_bounds = array<i64: 36, 8>}, {pipeline_mode = #tpu.pipeline_mode<synchronous>, transform_indices = @transform_3, window_bounds = array<i64: 1, 8>}, {pipeline_mode = #tpu.pipeline_mode<synchronous>, transform_indices = @transform_4, window_bounds = array<i64: 1, 8>}, {transform_indices = @transform_5, window_bounds = array<i64: 1, 16, 16, 8>}]} {
    %c0 = arith.constant 0 : index
    %c0_0 = arith.constant 0 : index
    %c0_1 = arith.constant 0 : index
    %c0_2 = arith.constant 0 : index
    %0 = vector.load %arg2[%c0, %c0_0, %c0_1, %c0_2] : memref<1x16x18x4xbf16, #tpu.memory_space<vmem>>, vector<1x16x18x4xbf16>
    %1 = vector.shape_cast %0 : vector<1x16x18x4xbf16> to vector<16x18x4xbf16>
    %c0_3 = arith.constant 0 : index
    %c0_4 = arith.constant 0 : index
    %c0_5 = arith.constant 0 : index
    %c0_6 = arith.constant 0 : index
    %c0_7 = arith.constant 0 : index
    %2 = vector.load %arg3[%c0_3, %c0_4, %c0_5, %c0_6, %c0_7] : memref<1x1x2x18x4xbf16, #tpu.memory_space<vmem>>, vector<1x1x2x18x4xbf16>
    %3 = vector.shape_cast %2 : vector<1x1x2x18x4xbf16> to vector<2x18x4xbf16>
    %4 = tpu.concatenate %1, %3 in 0 : vector<16x18x4xbf16>, vector<2x18x4xbf16> -> vector<18x18x4xbf16>
    %5 = vector.extract_strided_slice %4 {offsets = [0, 0, 0], sizes = [16, 16, 4], strides = [1, 1, 1]} : vector<18x18x4xbf16> to vector<16x16x4xbf16>
    %6 = vector.extract_strided_slice %4 {offsets = [0, 1, 0], sizes = [16, 16, 4], strides = [1, 1, 1]} : vector<18x18x4xbf16> to vector<16x16x4xbf16>
    %7 = vector.extract_strided_slice %4 {offsets = [0, 2, 0], sizes = [16, 16, 4], strides = [1, 1, 1]} : vector<18x18x4xbf16> to vector<16x16x4xbf16>
    %8 = vector.extract_strided_slice %4 {offsets = [1, 0, 0], sizes = [16, 16, 4], strides = [1, 1, 1]} : vector<18x18x4xbf16> to vector<16x16x4xbf16>
    %9 = vector.extract_strided_slice %4 {offsets = [1, 1, 0], sizes = [16, 16, 4], strides = [1, 1, 1]} : vector<18x18x4xbf16> to vector<16x16x4xbf16>
    %10 = vector.extract_strided_slice %4 {offsets = [1, 2, 0], sizes = [16, 16, 4], strides = [1, 1, 1]} : vector<18x18x4xbf16> to vector<16x16x4xbf16>
    %11 = vector.extract_strided_slice %4 {offsets = [2, 0, 0], sizes = [16, 16, 4], strides = [1, 1, 1]} : vector<18x18x4xbf16> to vector<16x16x4xbf16>
    %12 = vector.extract_strided_slice %4 {offsets = [2, 1, 0], sizes = [16, 16, 4], strides = [1, 1, 1]} : vector<18x18x4xbf16> to vector<16x16x4xbf16>
    %13 = vector.extract_strided_slice %4 {offsets = [2, 2, 0], sizes = [16, 16, 4], strides = [1, 1, 1]} : vector<18x18x4xbf16> to vector<16x16x4xbf16>
    %14 = tpu.concatenate %5, %6, %7, %8, %9, %10, %11, %12, %13 in 2 : vector<16x16x4xbf16>, vector<16x16x4xbf16>, vector<16x16x4xbf16>, vector<16x16x4xbf16>, vector<16x16x4xbf16>, vector<16x16x4xbf16>, vector<16x16x4xbf16>, vector<16x16x4xbf16>, vector<16x16x4xbf16> -> vector<16x16x36xbf16>
    %15 = vector.shape_cast %14 : vector<16x16x36xbf16> to vector<256x36xbf16>
    %c0_8 = arith.constant 0 : index
    %c0_9 = arith.constant 0 : index
    %16 = vector.load %arg4[%c0_8, %c0_9] : memref<36x8xbf16, #tpu.memory_space<vmem>>, vector<36x8xbf16>
    %cst = arith.constant dense<0.000000e+00> : vector<256x8xf32>
    %17 = tpu.matmul %15, %16, %cst {dimension_numbers = #tpu.dot_dimension_numbers<[1], [0], [0], [1], [0, 0, 1, 1], [], []>} : vector<256x36xbf16>, vector<36x8xbf16>, vector<256x8xf32> -> vector<256x8xf32>
    %c0_10 = arith.constant 0 : index
    %c0_11 = arith.constant 0 : index
    %18 = vector.load %arg5[%c0_10, %c0_11] : memref<1x8xf32, #tpu.memory_space<vmem>>, vector<1x8xf32>
    %19 = vector.broadcast %18 : vector<1x8xf32> to vector<256x8xf32>
    %20 = arith.mulf %17, %19 : vector<256x8xf32>
    %c0_12 = arith.constant 0 : index
    %c0_13 = arith.constant 0 : index
    %21 = vector.load %arg6[%c0_12, %c0_13] : memref<1x8xf32, #tpu.memory_space<vmem>>, vector<1x8xf32>
    %22 = vector.broadcast %21 : vector<1x8xf32> to vector<256x8xf32>
    %23 = arith.addf %20, %22 : vector<256x8xf32>
    %24 = vector.shape_cast %23 : vector<256x8xf32> to vector<16x16x8xf32>
    %c0_14 = arith.constant 0 : index
    %c0_15 = arith.constant 0 : index
    %c0_16 = arith.constant 0 : index
    %c0_17 = arith.constant 0 : index
    %25 = vector.load %arg7[%c0_14, %c0_15, %c0_16, %c0_17] : memref<1x16x16x8xf32, #tpu.memory_space<vmem>>, vector<1x16x16x8xf32>
    %26 = vector.shape_cast %25 : vector<1x16x16x8xf32> to vector<16x16x8xf32>
    %27 = vector.shape_cast %24 : vector<16x16x8xf32> to vector<1x16x16x8xf32>
    tpu.vector_store %arg7[%c0_14, %c0_15, %c0_16, %c0_17], %27 {strides = array<i32>} : memref<1x16x16x8xf32, #tpu.memory_space<vmem>>, vector<1x16x16x8xf32>,
    return
  }
  func.func @transform_0(%arg0: i32, %arg1: i32) -> (i32, i32, i32, i32) {
    %c0_i32 = arith.constant 0 : i32
    %c0_i32_0 = arith.constant 0 : i32
    %c0_i32_1 = arith.constant 0 : i32
    return %arg0, %arg1, %c0_i32, %c0_i32_0 : i32, i32, i32, i32
  }
  func.func @transform_1(%arg0: i32, %arg1: i32) -> (i32, i32, i32, i32, i32) {
    %c0_i32 = arith.constant 0 : i32
    %c0_i32_0 = arith.constant 0 : i32
    %c0_i32_1 = arith.constant 0 : i32
    %c0_i32_2 = arith.constant 0 : i32
    return %arg0, %arg1, %c0_i32, %c0_i32_0, %c0_i32_1 : i32, i32, i32, i32, i32
  }
  func.func @transform_2(%arg0: i32, %arg1: i32) -> (i32, i32) {
    %c0_i32 = arith.constant 0 : i32
    %c0_i32_0 = arith.constant 0 : i32
    %c0_i32_1 = arith.constant 0 : i32
    return %c0_i32, %c0_i32_0 : i32, i32
  }
  func.func @transform_3(%arg0: i32, %arg1: i32) -> (i32, i32) {
    %c0_i32 = arith.constant 0 : i32
    %c0_i32_0 = arith.constant 0 : i32
    %c0_i32_1 = arith.constant 0 : i32
    return %c0_i32, %c0_i32_0 : i32, i32
  }
  func.func @transform_4(%arg0: i32, %arg1: i32) -> (i32, i32) {
    %c0_i32 = arith.constant 0 : i32
    %c0_i32_0 = arith.constant 0 : i32
    %c0_i32_1 = arith.constant 0 : i32
    return %c0_i32, %c0_i32_0 : i32, i32
  }
  func.func @transform_5(%arg0: i32, %arg1: i32) -> (i32, i32, i32, i32) {
    %c0_i32 = arith.constant 0 : i32
    %c0_i32_0 = arith.constant 0 : i32
    %c0_i32_1 = arith.constant 0 : i32
    return %arg0, %arg1, %c0_i32, %c0_i32_0 : i32, i32, i32, i32
  }
}

</mosaic_0001>

<bundles_post_ra>
// kernel: basic_conv2d.1
= control target key start
LH: loop header
LB: loop body
LE: loop exit
PB: predicated region body
PF: predicated region fallthrough
CT: control target
= control target key end

     0   :  { %s2035_s18 = smov 0   ;;  %s2037_s19 = smov 0   ;;  %s2888_s0 = inlined_call_operand.vmem [shape: bf16[2,18,18,4], index: 0, kind: input, shape index: {}]   ;;  %s2889_s1 = inlined_call_operand.vmem [shape: bf16[2,1,2,18,4], index: 1, kind: input, shape index: {}]   ;;  %s2890_s2 = inlined_call_operand.vmem [shape: bf16[36,8], index: 2, kind: input, shape index: {}]   ;;  %s2891_s3 = inlined_call_operand.vmem [shape: f32[1,8], index: 3, kind: input, shape index: {}]   ;;  %s2892_s4 = inlined_call_operand.vmem [shape: f32[1,8], index: 4, kind: input, shape index: {}]   ;;  %s2893_s5 = inlined_call_operand.vmem [shape: f32[2,16,16,8], index: 5, kind: output, shape index: {}]  }
   0x1   :  { %s2039_s20 = smov 0  }
   0x2 LB: > { %s27_s21 = sadd.s32 1, %s1991_s19  ;;  %p1768_p0 = scmp.ge.s32.totalorder %s1995_s20, 1  ;;  %s1995_s20 = sphi %s2039_s20, %s15_s20   ;;  %s1991_s19 = sphi %s2037_s19, %s2895_s19   ;;  %s1987_s18 = sphi %s2035_s18, %s2894_s18  }
   0x3   : > { %p29_p1 = scmp.ge.s32.totalorder %s27_s21, 2  ;;  %p235_p2 = scmp.lt.s32.totalorder %s1995_s20, 3 }
   0x5   : > { %s2897_s21 = smov (%p29_p1, %s27_s21), 0  ;;  %p236_p3 = pnand %p1768_p0, %p235_p2 }
   0x6   : > { %p293_p4 = scmp.lt.s32.totalorder (!%p236_p3), %s1987_s18, 1  ;;  %s1997_s26 = smov (!%p236_p3), 12  }
   0x7   : > { %239 = sbr.rel (%p236_p3) target bundleno = 590 (0x24e), region = 40  ;;  %s1998_s27 = smov (!%p236_p3), 8  }
   0x8   : > { %s1999_s28 = smov (!%p236_p3), 4   ;;  %s2000_s29 = smov (!%p236_p3), 16  }
   0x9   : > { %s2001_s30 = smov (!%p236_p3), 20   ;;  %s2002_s6 = smov (!%p236_p3), 24  }
   0xa   : > { %s2003_s11 = smov (!%p236_p3), 28   ;;  %s2004_s14 = smov (!%p236_p3), 32  }
   0xc   : > { %s2899_s18 = smov (!%p293_p4, %s1987_s18), 1  ;;  %vm736_vm0 = vcmask 1046528   ;;  %vm511_vm1 = vsmask.f32 7424  ;;  %vm1372_vm2 = vcmask 1041408   ;;  %vm1055_vm3 = vcmask 31744  }
   0xd   : > { %s1898_s22 = smul.u32 216, %s2899_s18  ;;  %vm1088_vm4 = vcmask 64512   ;;  %vm1154_vm5 = vcmask 130048   ;;  %vm1121_vm6 = vcmask 97280   ;;  %vm1187_vm7 = vcmask 162816  }
   0xe   : > { %s1899_s15 = smul.u32 24, %s2899_s18  ;;  %vm1220_vm8 = vcmask 195584   ;;  %vm1253_vm9 = vcmask 228352   ;;  %vm1286_vm10 = vcmask 261120   ;;  %vm1339_vm11 = vcmask 293888  }
   0xf   : > { %s2059_s25 = scalar_lea.vmem %s2888_s0, %s1898_s22 }
  0x10   : > { %v2062_v0 = vld [vmem:[%s2059_s25 + $0x6c] sm:$0xff]   ;;  %v2072_v2 = vld [vmem:[%s2059_s25 + $0x60] sm:$0xff]   ;;  %v1935_v3 = vld [vmem:[%s2059_s25 + $0x68] ss:$0 sps:$4 sm:$0x11]   ;;  %s2244_s22 = scalar_lea.vmem %s2889_s1, %s1899_s15 }
  0x11   : > { %v2065_v1 = vld [vmem:[%s2059_s25 + $0xc] sm:$0xff]   ;;  %838 = vrot.lane.b32.xlu1 %v2062_v0, %s1997_s26  ;;  %v2076_v4 = vld [vmem:[%s2059_s25] sm:$0xff]   ;;  %v764_v5 = vrot.slane %v2062_v0, 1  ;;  %v761_v6 = vrot.slane %v2072_v2, 1  ;;  %v762_v7 = vrot.slane %v1935_v3, 1  ;;  %v621_v26 = vshrl.u32 %v2062_v0, 16 }
  0x12   : > { %822 = vrot.lane.b32.xlu0 %v2065_v1, %s1997_s26  ;;  %v1937_v8 = vld [vmem:[%s2059_s25 + $0x8] ss:$0 sps:$4 sm:$0x11]   ;;  %v740_v9 = vrot.slane %v2065_v1, 1  ;;  %v737_v10 = vrot.slane %v2076_v4, 1  ;;  %v525_v16 = vshrl.u32 %v2065_v1, 16 }
  0x13   : > { %v1938_v11 = vld [vmem:[%s2059_s25 + $0x74] ss:$0 sps:$4 sm:$0x11]   ;;  %v2085_v12 = vsel %vm736_vm0, %v761_v6, %v762_v7  ;;  %v738_v13 = vrot.slane %v1937_v8, 1  ;;  %v527_v17 = vshll.u32 %v2065_v1, 16  ;;  %v513_v18 = vshrl.u32 %v2076_v4, 16 }
  0x14   : > { %v1939_v14 = vld [vmem:[%s2059_s25 + $0x14] ss:$0 sps:$4 sm:$0x11]   ;;  %v765_v15 = vrot.slane %v1938_v11, 1  ;;  %v515_v22 = vshll.u32 %v2076_v4, 16  ;;  %v520_v25 = vshll.u32 %v1937_v8, 16 }
  0x15   : > { %801 = vrot.lane.b32.xlu1 %v2085_v12, %s1998_s27  ;;  %v739_v19 = vsel %vm736_vm0, %v737_v10, %v738_v13  ;;  %v741_v20 = vrot.slane %v1939_v14, 1  ;;  %v532_v21 = vshll.u32 %v1939_v14, 16  ;;  %v529_v24 = vrot.slane %v527_v17, 1  ;;  %v2107_v39 = vld [vmem:[%s2059_s25 + $0x78] sm:$0xff]   ;;  %v2165_v14 = vld [vmem:[%s2059_s25 + $0x24] sm:$0xff]  }
  0x16   : > { %785 = vrot.lane.b32.xlu0 %v739_v19, %s1998_s27  ;;  %v2097_v23 = vsel %vm736_vm0, %v764_v5, %v765_v15  ;;  %v517_v29 = vrot.slane %v515_v22, 1  ;;  %v623_v30 = vshll.u32 %v2062_v0, 16  ;;  %v522_v32 = vrot.slane %v520_v25, 1  ;;  %v2113_v46 = vld [vmem:[%s2059_s25 + $0x18] sm:$0xff]  }
  0x17   : > { %v742_v27 = vsel %vm736_vm0, %v740_v9, %v741_v20  ;;  %v534_v28 = vrot.slane %v532_v21, 1  ;;  %v530_v31 = vor.u32 %v529_v24, %v525_v16  ;;  %v628_v33 = vshll.u32 %v1938_v11, 16  ;;  %v1942_v47 = vld [vmem:[%s2059_s25 + $0x80] ss:$0 sps:$4 sm:$0x11]   ;;  %v2158_v11 = vld [vmem:[%s2059_s25 + $0x84] sm:$0xff]  }
  0x18   : > { %v609_v34 = vshrl.u32 %v2072_v2, 16  ;;  %v518_v35 = vor.u32 %v517_v29, %v513_v18  ;;  %v625_v36 = vrot.slane %v623_v30, 1  ;;  %v611_v37 = vshll.u32 %v2072_v2, 16  ;;  %v1943_v52 = vld [vmem:[%s2059_s25 + $0x20] ss:$0 sps:$4 sm:$0x11]  }
  0x19   : > { %803 = vrot.lane.b32.xlu1 %v2097_v23, %s1998_s27  ;;  %v616_v38 = vshll.u32 %v1935_v3, 16  ;;  %v535_v40 = vsel %vm511_vm1, %v530_v31, %v534_v28  ;;  %v630_v41 = vrot.slane %v628_v33, 1  ;;  %v635_v50 = vshll.u32 %v2107_v39, 16  ;;  %v1946_v15 = vld [vmem:[%s2059_s25 + $0x8c] ss:$0 sps:$4 sm:$0x11]  }
  0x1a   : > { %787 = vrot.lane.b32.xlu0 %v742_v27, %s1998_s27  ;;  %v523_v42 = vsel %vm511_vm1, %v518_v35, %v522_v32  ;;  %v626_v43 = vor.u32 %v625_v36, %v621_v26  ;;  %v613_v44 = vrot.slane %v611_v37, 1  ;;  %v539_v53 = vshll.u32 %v2113_v46, 16  ;;  %v1947_v17 = vld [vmem:[%s2059_s25 + $0x2c] ss:$0 sps:$4 sm:$0x11]   ;;  %v1964_v33 = vld [vmem:[%s2890_s2] sm:$0xff]  }
  0x1b   : > { %v618_v45 = vrot.slane %v616_v38, 1  ;;  %v633_v54 = vshrl.u32 %v2107_v39, 16  ;;  %v637_v55 = vrot.slane %v635_v50, 1  ;;  %v640_v56 = vshll.u32 %v1942_v47, 16  ;;  %v1961_v28 = vld [vmem:[%s2890_s2 + $0x8] sm:$0xff]  }
  0x1c   : > { %v2118_v48 = vsel %vm511_vm1, %v626_v43, %v630_v41  ;;  %v614_v49 = vor.u32 %v613_v44, %v609_v34  ;;  %v537_v57 = vshrl.u32 %v2113_v46, 16  ;;  %v541_v58 = vrot.slane %v539_v53, 1  ;;  %v1960_v19 = vld [vmem:[%s2890_s2 + $0x10] ss:$0 sps:$4 sm:$0x33]  }
  0x1d   : > { %706 = vrot.lane.b32.xlu1 %v535_v40, %s1999_s28  ;;  %v544_v59 = vshll.u32 %v1943_v52, 16  ;;  %v638_v60 = vor.u32 %v637_v55, %v633_v54  ;;  %v642_v61 = vrot.slane %v640_v56, 1  ;;  %v767_v6 = vrot.slane %v2107_v39, 1  ;;  %1896 = vmatprep.subr.msk.bf16.mxu0 %vm1372_vm2, %v1960_v19  ;;  %v2221_v43 = vld [vmem:[%s2059_s25 + $0x90] sm:$0xff]  }
  0x1e   : > { %704 = vrot.lane.b32.xlu0 %v523_v42, %s1999_s28  ;;  %v2123_v51 = vsel %vm511_vm1, %v614_v49, %v618_v45  ;;  %v542_v62 = vor.u32 %v541_v58, %v537_v57  ;;  %v768_v7 = vrot.slane %v1942_v47, 1  ;;  %v743_v8 = vrot.slane %v2113_v46, 1  ;;  %1897 = vmatprep.subr.msk.bf16.mxu1 %vm1372_vm2, %v1960_v19  ;;  %v2226_v44 = vld [vmem:[%s2059_s25 + $0x30] sm:$0xff]   ;;  %v1950_v45 = vld [vmem:[%s2059_s25 + $0x98] ss:$0 sps:$4 sm:$0x11]  }
  0x1f   : > { %v546_v63 = vrot.slane %v544_v59, 1  ;;  %v2140_v3 = vsel %vm511_vm1, %v638_v60, %v642_v61  ;;  %v744_v9 = vrot.slane %v1943_v52, 1  ;;  %v647_v16 = vshll.u32 %v2158_v11, 16  ;;  %v1951_v49 = vld [vmem:[%s2059_s25 + $0x38] ss:$0 sps:$4 sm:$0x11]  }
  0x20   : > { %v2155_v10 = vsel %vm736_vm0, %v767_v6, %v768_v7  ;;  %v551_v18 = vshll.u32 %v2165_v14, 16  ;;  %v645_v20 = vshrl.u32 %v2158_v11, 16  ;;  %v652_v22 = vshll.u32 %v1946_v15, 16 }
  0x21   : > { %722 = vrot.lane.b32.xlu1 %v2118_v48, %s1999_s28  ;;  %v2144_v5 = vsel %vm511_vm1, %v542_v62, %v546_v63  ;;  %v2162_v13 = vsel %vm736_vm0, %v743_v8, %v744_v9  ;;  %v649_v21 = vrot.slane %v647_v16, 1  ;;  %v1374_v24 = vsel %vm1372_vm2, %v1960_v19, 0  ;;  %v2261_v9 = vld [vmem:[%s2059_s25 + $0x9c] sm:$0xff]  }
  0x22   : > { %720 = vrot.lane.b32.xlu0 %v2123_v51, %s1999_s28  ;;  %v549_v25 = vshrl.u32 %v2165_v14, 16  ;;  %v553_v26 = vrot.slane %v551_v18, 1  ;;  %1853 = vmatpush3.bf16.msra.mxu0 %v1374_v24  ;;  %v654_v30 = vrot.slane %v652_v22, 1  ;;  %v770_v36 = vrot.slane %v2158_v11, 1 }
  0x23   : > { %1893 = vmatpush3.bf16.msra.mxu1 %v1374_v24  ;;  %v650_v29 = vor.u32 %v649_v21, %v645_v20  ;;  %1854 = vmatprep.subr.bf16.mxu0 %v1961_v28  ;;  %v771_v37 = vrot.slane %v1946_v15, 1  ;;  %v746_v38 = vrot.slane %v2165_v14, 1  ;;  %v659_v47 = vshll.u32 %v2221_v43, 16  ;;  %v1954_v15 = vld [vmem:[%s2059_s25 + $0xa4] ss:$0 sps:$4 sm:$0x11]  }
  0x24   : > { %v554_v31 = vor.u32 %v553_v26, %v549_v25  ;;  %1891 = vmatprep.subr.bf16.mxu1 %v1961_v28  ;;  %v563_v50 = vshll.u32 %v2226_v44, 16  ;;  %v664_v52 = vshll.u32 %v1950_v45, 16  ;;  %v657_v53 = vshrl.u32 %v2221_v43, 16 }
  0x25   : > { %840 = vrot.lane.b32.xlu1 %v2107_v39, %s1997_s26  ;;  %v655_v34 = vsel %vm511_vm1, %v650_v29, %v654_v30  ;;  %v772_v41 = vsel %vm736_vm0, %v770_v36, %v771_v37  ;;  %v661_v54 = vrot.slane %v659_v47, 1  ;;  %v561_v55 = vshrl.u32 %v2226_v44, 16 }
  0x26   : > { %824 = vrot.lane.b32.xlu0 %v2113_v46, %s1997_s26  ;;  %1855 = vmatpush3.bf16.msra.mxu0 %v1961_v28  ;;  %v565_v56 = vrot.slane %v563_v50, 1  ;;  %v568_v57 = vshll.u32 %v1951_v49, 16  ;;  %v666_v58 = vrot.slane %v664_v52, 1  ;;  %v749_v6 = vrot.slane %v2226_v44, 1 }
  0x27   : > { %1894 = vmatpush3.bf16.msra.mxu1 %v1961_v28  ;;  %1856 = vmatprep.subr.bf16.mxu0 %v1964_v33  ;;  %v662_v59 = vor.u32 %v661_v54, %v657_v53  ;;  %v750_v7 = vrot.slane %v1951_v49, 1  ;;  %v671_v16 = vshll.u32 %v2261_v9, 16  ;;  %v669_v19 = vshrl.u32 %v2261_v9, 16 }
  0x28   : > { %1892 = vmatprep.subr.bf16.mxu1 %v1964_v33  ;;  %v566_v60 = vor.u32 %v565_v56, %v561_v55  ;;  %v570_v61 = vrot.slane %v568_v57, 1  ;;  %v676_v21 = vshll.u32 %v1954_v15, 16  ;;  %v776_v36 = vrot.slane %v2261_v9, 1  ;;  %v2327_v56 = vld [vmem:[%s2059_s25 + $0xa8] sm:$0xff]  }
  0x29   : > { %885 = vrot.lane.b32.xlu1 %v2118_v48, %s2000_s29  ;;  %v667_v62 = vsel %vm511_vm1, %v662_v59, %v666_v58  ;;  %v673_v20 = vrot.slane %v671_v16, 1  ;;  %v777_v37 = vrot.slane %v1954_v15, 1  ;;  %v2333_v58 = vld [vmem:[%s2059_s25 + $0x48] sm:$0xff]  }
  0x2a   : > { %869 = vrot.lane.b32.xlu0 %v535_v40, %s2000_s29  ;;  %1857 = vmatpush3.bf16.msra.mxu0 %v1964_v33  ;;  %v747_v40 = vrot.slane %v1947_v17, 1  ;;  %v571_v63 = vsel %vm511_vm1, %v566_v60, %v570_v61  ;;  %v1958_v60 = vld [vmem:[%s2059_s25 + $0xb0] ss:$0 sps:$4 sm:$0x11]   ;;  %v683_v61 = vshll.u32 %v2327_v56, 16  ;;  %v585_v15 = vshrl.u32 %v2333_v58, 16 }
  0x2b   : > { %1895 = vmatpush3.bf16.msra.mxu1 %v1964_v33  ;;  %v674_v26 = vor.u32 %v673_v20, %v669_v19 }
  0x2c   : > { %v748_v42 = vsel %vm736_vm0, %v746_v38, %v747_v40 }
  0x2d   : > { %887 = vrot.lane.b32.xlu1 %v2140_v3, %s2000_s29 }
  0x2e   : > { %871 = vrot.lane.b32.xlu0 %v2144_v5, %s2000_s29 }
  0x31   : > { %920 = vrot.lane.b32.xlu1 %v2097_v23, %s2001_s30 }
  0x32   : > { %904 = vrot.lane.b32.xlu0 %v742_v27, %s2001_s30  ;;  %v556_v27 = vshll.u32 %v1947_v17, 16  ;;  %v1955_v17 = vld [vmem:[%s2059_s25 + $0x44] ss:$0 sps:$4 sm:$0x11]  }
  0x33   : > { %v580_v25 = vshll.u32 %v1955_v17, 16 }
  0x34   : > { %v558_v32 = vrot.slane %v556_v27, 1  ;;  %v678_v27 = vrot.slane %v676_v21, 1 }
  0x35   : > { %922 = vrot.lane.b32.xlu1 %v2155_v10, %s2001_s30  ;;  %v582_v29 = vrot.slane %v580_v25, 1 }
  0x36   : > { %906 = vrot.lane.b32.xlu0 %v2162_v13, %s2001_s30  ;;  %v559_v35 = vsel %vm511_vm1, %v554_v31, %v558_v32  ;;  %v679_v31 = vsel %vm511_vm1, %v674_v26, %v678_v27 }
  0x39   : > { %957 = vrot.lane.b32.xlu1 %v2107_v39, %s2002_s6 }
  0x3a   : > { %941 = vrot.lane.b32.xlu0 %v2113_v46, %s2002_s6 }
  0x3d   : > { %959 = vrot.lane.b32.xlu1 %v2158_v11, %s2002_s6 }
  0x3e   : > { %943 = vrot.lane.b32.xlu0 %v2165_v14, %s2002_s6 }
  0x41   : > { %1004 = vrot.lane.b32.xlu1 %v2140_v3, %s2003_s11 }
  0x42   : > { %988 = vrot.lane.b32.xlu0 %v2144_v5, %s2003_s11 }
  0x45   : > { %1006 = vrot.lane.b32.xlu1 %v655_v34, %s2003_s11 }
  0x46   : > { %990 = vrot.lane.b32.xlu0 %v559_v35, %s2003_s11 }
  0x49   : > { %1039 = vrot.lane.b32.xlu1 %v2155_v10, %s2004_s14 }
  0x4a   : > { %1023 = vrot.lane.b32.xlu0 %v2162_v13, %s2004_s14 }
  0x4d   : > { %724 = vrot.lane.b32.xlu1 %v2140_v3, %s1999_s28  ;;  %v773_v3 = vrot.slane %v2221_v43, 1 }
  0x4e   : > { %708 = vrot.lane.b32.xlu0 %v2144_v5, %s1999_s28  ;;  %v774_v5 = vrot.slane %v1950_v45, 1  ;;  %v778_v45 = vsel %vm736_vm0, %v776_v36, %v777_v37  ;;  %v779_v36 = vrot.slane %v2327_v56, 1  ;;  %v780_v37 = vrot.slane %v1958_v60, 1 }
  0x50   : > { %v775_v8 = vsel %vm736_vm0, %v773_v3, %v774_v5  ;;  %v587_v3 = vshll.u32 %v2333_v58, 16 }
  0x51   : > { %1041 = vrot.lane.b32.xlu1 %v772_v41, %s2004_s14 }
  0x52   : > { %1025 = vrot.lane.b32.xlu0 %v748_v42, %s2004_s14  ;;  %v589_v16 = vrot.slane %v587_v3, 1  ;;  %v2389_v3 = vld [vmem:[%s2059_s25 + $0xb4] sm:$0xff]  }
  0x55   : > { %726 = vrot.lane.b32.xlu1 %v655_v34, %s1999_s28 }
  0x56   : > { %710 = vrot.lane.b32.xlu0 %v559_v35, %s1999_s28 }
  0x59   : > { %805 = vrot.lane.b32.xlu1 %v2155_v10, %s1998_s27  ;;  %v751_v10 = vsel %vm736_vm0, %v749_v6, %v750_v7  ;;  %v681_v6 = vshrl.u32 %v2327_v56, 16  ;;  %v685_v7 = vrot.slane %v683_v61, 1 }
  0x5a   : > { %789 = vrot.lane.b32.xlu0 %v2162_v13, %s1998_s27  ;;  %v2266_v13 = vld [vmem:[%s2059_s25 + $0x3c] sm:$0xff]  }
  0x5b   : > { %v575_v18 = vshll.u32 %v2266_v13, 16  ;;  %v573_v22 = vshrl.u32 %v2266_v13, 16  ;;  %v752_v40 = vrot.slane %v2266_v13, 1  ;;  %v686_v19 = vor.u32 %v685_v7, %v681_v6 }
  0x5d   : > { %807 = vrot.lane.b32.xlu1 %v772_v41, %s1998_s27  ;;  %v577_v24 = vrot.slane %v575_v18, 1 }
  0x5e   : > { %791 = vrot.lane.b32.xlu0 %v748_v42, %s1998_s27 }
  0x5f   : > { %v578_v28 = vor.u32 %v577_v24, %v573_v22  ;;  %v590_v22 = vor.u32 %v589_v16, %v585_v15 }
  0x61   : > { %842 = vrot.lane.b32.xlu1 %v2158_v11, %s1997_s26  ;;  %v583_v33 = vsel %vm511_vm1, %v578_v28, %v582_v29 }
  0x62   : > { %826 = vrot.lane.b32.xlu0 %v2165_v14, %s1997_s26 }
  0x65   : > { %844 = vrot.lane.b32.xlu1 %v2221_v43, %s1997_s26 }
  0x66   : > { %828 = vrot.lane.b32.xlu0 %v2226_v44, %s1997_s26 }
  0x69   : > { %889 = vrot.lane.b32.xlu1 %v655_v34, %s2000_s29 }
  0x6a   : > { %873 = vrot.lane.b32.xlu0 %v559_v35, %s2000_s29 }
  0x6d   : > { %891 = vrot.lane.b32.xlu1 %v667_v62, %s2000_s29 }
  0x6e   : > { %875 = vrot.lane.b32.xlu0 %v571_v63, %s2000_s29 }
  0x71   : > { %924 = vrot.lane.b32.xlu1 %v772_v41, %s2001_s30  ;;  %v753_v41 = vrot.slane %v1955_v17, 1 }
  0x72   : > { %908 = vrot.lane.b32.xlu0 %v748_v42, %s2001_s30 }
  0x73   : > { %v2312_v49 = vsel %vm736_vm0, %v752_v40, %v753_v41 }
  0x75   : > { %926 = vrot.lane.b32.xlu1 %v775_v8, %s2001_s30 }
  0x76   : > { %910 = vrot.lane.b32.xlu0 %v751_v10, %s2001_s30 }
  0x79   : > { %961 = vrot.lane.b32.xlu1 %v2221_v43, %s2002_s6 }
  0x7a   : > { %945 = vrot.lane.b32.xlu0 %v2226_v44, %s2002_s6 }
  0x7d   : > { %963 = vrot.lane.b32.xlu1 %v2261_v9, %s2002_s6 }
  0x7e   : > { %947 = vrot.lane.b32.xlu0 %v2266_v13, %s2002_s6 }
  0x81   : > { %1008 = vrot.lane.b32.xlu1 %v667_v62, %s2003_s11 }
  0x82   : > { %992 = vrot.lane.b32.xlu0 %v571_v63, %s2003_s11 }
  0x83   : > { %v2285_v30 = vpop.permute.xlu1 %838 }
  0x84   : > { %v2289_v32 = vpop.permute.xlu0 %822 }
  0x85   : > { %1010 = vrot.lane.b32.xlu1 %v679_v31, %s2003_s11 }
  0x86   : > { %994 = vrot.lane.b32.xlu0 %v583_v33, %s2003_s11 }
  0x87   : > { %v2294_v34 = vpop.permute.xlu1 %801 }
  0x88   : > { %v2296_v35 = vpop.permute.xlu0 %785 }
  0x89   : > { %1043 = vrot.lane.b32.xlu1 %v775_v8, %s2004_s14 }
  0x8a   : > { %1027 = vrot.lane.b32.xlu0 %v751_v10, %s2004_s14 }
  0x8b   : > { %v2301_v38 = vpop.permute.xlu1 %803 }
  0x8c   : > { %v2304_v42 = vpop.permute.xlu0 %787 }
  0x8d   : > { %728 = vrot.lane.b32.xlu1 %v667_v62, %s1999_s28 }
  0x8e   : > { %712 = vrot.lane.b32.xlu0 %v571_v63, %s1999_s28  ;;  %v1959_v63 = vld [vmem:[%s2059_s25 + $0x50] ss:$0 sps:$4 sm:$0x11]  }
  0x8f   : > { %v2309_v47 = vpop.permute.xlu1 %706  ;;  %v592_v17 = vshll.u32 %v1959_v63, 16  ;;  %v756_v40 = vrot.slane %v1959_v63, 1 }
  0x90   : > { %v705_v50 = vpop.permute.xlu0 %704 }
  0x91   : > { %1045 = vrot.lane.b32.xlu1 %v778_v45, %s2004_s14  ;;  %v594_v24 = vrot.slane %v592_v17, 1  ;;  %v1057_v6 = vsel %vm1055_vm3, %v2076_v4, %v705_v50 }
  0x92   : > { %1029 = vrot.lane.b32.xlu0 %v2312_v49, %s2004_s14  ;;  %v1090_v4 = vsel %vm1088_vm4, %v1057_v6, %v2296_v35  ;;  %v2418_v35 = vld [vmem:[%s2059_s25 + $0x5c] ss:$0 sps:$4 sm:$0x11]  }
  0x93   : > { %v2317_v52 = vpop.permute.xlu1 %722  ;;  %v2370_v28 = vsel %vm511_vm1, %v590_v22, %v594_v24  ;;  %v693_v22 = vshrl.u32 %v2389_v3, 16 }
  0x94   : > { %v721_v53 = vpop.permute.xlu0 %720 }
  0x95   : > { %730 = vrot.lane.b32.xlu1 %v679_v31, %s1999_s28  ;;  %v1073_v41 = vsel %vm1055_vm3, %v2072_v2, %v721_v53 }
  0x96   : > { %714 = vrot.lane.b32.xlu0 %v583_v33, %s1999_s28  ;;  %v1106_v53 = vsel %vm1088_vm4, %v1073_v41, %v2294_v34  ;;  %v695_v34 = vshll.u32 %v2389_v3, 16 }
  0x97   : > { %v2321_v54 = vpop.permute.xlu1 %840  ;;  %v1139_v50 = vsel %vm1121_vm6, %v1106_v53, %v2285_v30  ;;  %v604_v53 = vshll.u32 %v2418_v35, 16 }
  0x98   : > { %v2323_v55 = vpop.permute.xlu0 %824 }
  0x99   : > { %809 = vrot.lane.b32.xlu1 %v775_v8, %s1998_s27  ;;  %v688_v8 = vshll.u32 %v1958_v60, 16  ;;  %v2386_v60 = vsel %vm736_vm0, %v779_v36, %v780_v37  ;;  %v697_v36 = vrot.slane %v695_v34, 1 }
  0x9a   : > { %793 = vrot.lane.b32.xlu0 %v751_v10, %s1998_s27 }
  0x9b   : > { %v2330_v57 = vpop.permute.xlu1 %885  ;;  %v690_v20 = vrot.slane %v688_v8, 1 }
  0x9c   : > { %v2335_v59 = vpop.permute.xlu0 %869  ;;  %v1172_v16 = vsel %vm1154_vm5, %v1139_v50, %v2330_v57 }
  0x9d   : > { %811 = vrot.lane.b32.xlu1 %v778_v45, %s1998_s27  ;;  %v2366_v26 = vsel %vm511_vm1, %v686_v19, %v690_v20  ;;  %v1123_v19 = vsel %vm1121_vm6, %v1090_v4, %v2289_v32  ;;  %v1075_v32 = vsel %vm1055_vm3, %v2062_v0, %v2317_v52  ;;  %v1059_v0 = vsel %vm1055_vm3, %v2065_v1, %v2309_v47 }
  0x9e   : > { %795 = vrot.lane.b32.xlu0 %v2312_v49, %s1998_s27  ;;  %v1156_v57 = vsel %vm1154_vm5, %v1123_v19, %v2335_v59  ;;  %v698_v4 = vor.u32 %v697_v36, %v693_v22  ;;  %v1092_v47 = vsel %vm1088_vm4, %v1059_v0, %v2304_v42 }
  0x9f   : > { %v2342_v62 = vpop.permute.xlu1 %887 }
  0xa0   : > { %v2346_v5 = vpop.permute.xlu0 %871 }
  0xa1   : > { %846 = vrot.lane.b32.xlu1 %v2261_v9, %s1997_s26 }
  0xa2   : > { %830 = vrot.lane.b32.xlu0 %v2266_v13, %s1997_s26 }
  0xa3   : > { %v921_v10 = vpop.permute.xlu1 %920 }
  0xa4   : > { %v2354_v18 = vpop.permute.xlu0 %904  ;;  %v1205_v20 = vsel %vm1187_vm7, %v1172_v16, %v921_v10  ;;  %v606_v16 = vrot.slane %v604_v53, 1  ;;  %v1967_v53 = vld [vmem:[%s2244_s22] sm:$0xff]  }
  0xa5   : > { %848 = vrot.lane.b32.xlu1 %v2327_v56, %s1997_s26  ;;  %v1189_v10 = vsel %vm1187_vm7, %v1156_v57, %v2354_v18 }
  0xa6   : > { %832 = vrot.lane.b32.xlu0 %v2333_v58, %s1997_s26 }
  0xa7   : > { %v2360_v21 = vpop.permute.xlu1 %922 }
  0xa8   : > { %v2362_v25 = vpop.permute.xlu0 %906 }
  0xa9   : > { %893 = vrot.lane.b32.xlu1 %v679_v31, %s2000_s29 }
  0xaa   : > { %877 = vrot.lane.b32.xlu0 %v583_v33, %s2000_s29  ;;  %v755_v33 = vrot.slane %v2333_v58, 1 }
  0xab   : > { %v958_v27 = vpop.permute.xlu1 %957 }
  0xac   : > { %v942_v29 = vpop.permute.xlu0 %941  ;;  %v2398_v7 = vsel %vm736_vm0, %v755_v33, %v756_v40  ;;  %v1238_v24 = vsel %vm1220_vm8, %v1205_v20, %v958_v27 }
  0xad   : > { %895 = vrot.lane.b32.xlu1 %v2366_v26, %s2000_s29  ;;  %v1222_v27 = vsel %vm1220_vm8, %v1189_v10, %v942_v29  ;;  %v1108_v29 = vsel %vm1088_vm4, %v1075_v32, %v2301_v38 }
  0xae   : > { %879 = vrot.lane.b32.xlu0 %v2370_v28, %s2000_s29  ;;  %v1141_v50 = vsel %vm1121_vm6, %v1108_v29, %v2321_v54  ;;  %v860_v29 = vshll.u32 %v1967_v53, 16 }
  0xaf   : > { %v2377_v31 = vpop.permute.xlu1 %959  ;;  %v1174_v38 = vsel %vm1154_vm5, %v1141_v50, %v2342_v62 }
  0xb0   : > { %v2382_v61 = vpop.permute.xlu0 %943  ;;  %v1207_v54 = vsel %vm1187_vm7, %v1174_v38, %v2360_v21 }
  0xb1   : > { %928 = vrot.lane.b32.xlu1 %v778_v45, %s2001_s30  ;;  %v2401_v45 = vld [vmem:[%s2059_s25 + $0x54] sm:$0xff]   ;;  %v1240_v42 = vsel %vm1220_vm8, %v1207_v54, %v2377_v31 }
  0xb2   : > { %912 = vrot.lane.b32.xlu0 %v2312_v49, %s2001_s30  ;;  %v2408_v49 = vld [vmem:[%s2059_s25 + $0xbc] ss:$0 sps:$4 sm:$0x11]   ;;  %v599_v17 = vshll.u32 %v2401_v45, 16  ;;  %v597_v59 = vshrl.u32 %v2401_v45, 16  ;;  %v758_v10 = vrot.slane %v2401_v45, 1 }
  0xb3   : > { %v1005_v63 = vpop.permute.xlu1 %1004  ;;  %v700_v37 = vshll.u32 %v2408_v49, 16 }
  0xb4   : > { %v989_v8 = vpop.permute.xlu0 %988  ;;  %v1271_v33 = vsel %vm1253_vm9, %v1238_v24, %v1005_v63  ;;  %v601_v6 = vrot.slane %v599_v17, 1  ;;  %v1125_v17 = vsel %vm1121_vm6, %v1092_v47, %v2323_v55 }
  0xb5   : > { %930 = vrot.lane.b32.xlu1 %v2386_v60, %s2001_s30  ;;  %v1255_v52 = vsel %vm1253_vm9, %v1222_v27, %v989_v8  ;;  %v702_v34 = vrot.slane %v700_v37, 1  ;;  %v1158_v20 = vsel %vm1154_vm5, %v1125_v17, %v2346_v5  ;;  %v783_v37 = vrot.slane %v2408_v49, 1 }
  0xb6   : > { %914 = vrot.lane.b32.xlu0 %v2398_v7, %s2001_s30  ;;  %v602_v8 = vor.u32 %v601_v6, %v597_v59  ;;  %v1191_v22 = vsel %vm1187_vm7, %v1158_v20, %v2362_v25 }
  0xb7   : > { %v1007_v15 = vpop.permute.xlu1 %1006  ;;  %v703_v62 = vsel %vm511_vm1, %v698_v4, %v702_v34  ;;  %v1224_v57 = vsel %vm1220_vm8, %v1191_v22, %v2382_v61  ;;  %v862_v34 = vrot.slane %v860_v29, 1  ;;  %v901_v22 = vrot.slane %v1967_v53, 1 }
  0xb8   : > { %v991_v30 = vpop.permute.xlu0 %990  ;;  %v1273_v55 = vsel %vm1253_vm9, %v1240_v42, %v1007_v15  ;;  %v607_v5 = vsel %vm511_vm1, %v602_v8, %v606_v16 }
  0xb9   : > { %965 = vrot.lane.b32.xlu1 %v2327_v56, %s2002_s6  ;;  %v1257_v31 = vsel %vm1253_vm9, %v1224_v57, %v991_v30  ;;  %v782_v30 = vrot.slane %v2389_v3, 1  ;;  %v2563_v57 = vld [vmem:[%s2244_s22 + $0xc] sm:$0xff]  }
  0xba   : > { %949 = vrot.lane.b32.xlu0 %v2333_v58, %s2002_s6 }
  0xbb   : > { %v1040_v40 = vpop.permute.xlu1 %1039  ;;  %v784_v59 = vsel %vm736_vm0, %v782_v30, %v783_v37  ;;  %v979_v30 = vshll.u32 %v2563_v57, 16 }
  0xbc   : > { %v1304_v41 = vsel %vm1286_vm10, %v1271_v33, %v1040_v40  ;;  %v1024_v18 = vpop.permute.xlu0 %1023  ;;  %v759_v33 = vrot.slane %v2418_v35, 1 }
  0xbd   : > { %967 = vrot.lane.b32.xlu1 %v2389_v3, %s2002_s6  ;;  %1874 = vmatprep.mubr.msk.bf16.mxu1 %vm1339_vm11, %v1304_v41  ;;  %v1288_v63 = vsel %vm1286_vm10, %v1255_v52, %v1024_v18  ;;  %v1968_v18 = vld [vmem:[%s2244_s22 + $0x8] ss:$0 sps:$4 sm:$0x11]  }
  0xbe   : > { %951 = vrot.lane.b32.xlu0 %v2401_v45, %s2002_s6  ;;  %1858 = vmatprep.mubr.msk.bf16.mxu0 %vm1339_vm11, %v1288_v63  ;;  %v760_v27 = vsel %vm736_vm0, %v758_v10, %v759_v33  ;;  %v865_v50 = vshll.u32 %v1968_v18, 16 }
  0xbf   : > { %v2458_v1 = vpop.permute.xlu1 %724 }
  0xc0   : > { %v2468_v19 = vpop.permute.xlu0 %708  ;;  %v867_v8 = vrot.slane %v865_v50, 1 }
  0xc1   : > { %1012 = vrot.lane.b32.xlu1 %v2366_v26, %s2003_s11  ;;  %v1061_v37 = vsel %vm1055_vm3, %v2113_v46, %v2468_v19  ;;  %v977_v46 = vshrl.u32 %v2563_v57, 16 }
  0xc2   : > { %996 = vrot.lane.b32.xlu0 %v2370_v28, %s2003_s11 }
  0xc3   : > { %v1042_v21 = vpop.permute.xlu1 %1041 }
  0xc4   : > { %v1306_v24 = vsel %vm1286_vm10, %v1273_v55, %v1042_v21  ;;  %v1026_v36 = vpop.permute.xlu0 %1025 }
  0xc5   : > { %1014 = vrot.lane.b32.xlu1 %v703_v62, %s2003_s11  ;;  %1875 = vmatmul.mubr.msk.bf16.vlgmr.msra.gmra.mxu1 %vm1339_vm11, %v1306_v24  ;;  %v1290_v25 = vsel %vm1286_vm10, %v1257_v31, %v1026_v36 }
  0xc6   : > { %998 = vrot.lane.b32.xlu0 %v607_v5, %s2003_s11  ;;  %1859 = vmatmul.mubr.msk.bf16.vlgmr.msra.gmra.mxu0 %vm1339_vm11, %v1290_v25  ;;  %v2573_v25 = vld [vmem:[%s2244_s22 + $0x14] ss:$0 sps:$4 sm:$0x11]  }
  0xc7   : > { %v2492_v15 = vpop.permute.xlu1 %726  ;;  %v984_v29 = vshll.u32 %v2573_v25, 16 }
  0xc8   : > { %v2494_v61 = vpop.permute.xlu0 %710 }
  0xc9   : > { %1047 = vrot.lane.b32.xlu1 %v2386_v60, %s2004_s14 }
  0xca   : > { %1031 = vrot.lane.b32.xlu0 %v2398_v7, %s2004_s14 }
  0xcb   : > { %v806_v32 = vpop.permute.xlu1 %805 }
  0xcc   : > { %v2504_v40 = vpop.permute.xlu0 %789 }
  0xcd   : > { %732 = vrot.lane.b32.xlu1 %v2366_v26, %s1999_s28 }
  0xce   : > { %716 = vrot.lane.b32.xlu0 %v2370_v28, %s1999_s28 }
  0xcf   : > { %v2511_v49 = vpop.permute.xlu1 %807 }
  0xd0   : > { %v2514_v41 = vpop.permute.xlu0 %791 }
  0xd1   : > { %1049 = vrot.lane.b32.xlu1 %v784_v59, %s2004_s14 }
  0xd2   : > { %1033 = vrot.lane.b32.xlu0 %v760_v27, %s2004_s14 }
  0xd3   : > { %v843_v35 = vpop.permute.xlu1 %842 }
  0xd4   : > { %v827_v6 = vpop.permute.xlu0 %826 }
  0xd5   : > { %734 = vrot.lane.b32.xlu1 %v703_v62, %s1999_s28 }
  0xd6   : > { %718 = vrot.lane.b32.xlu0 %v607_v5, %s1999_s28 }
  0xd7   : > { %v2520_v26 = vpop.permute.xlu1 %844 }
  0xd8   : > { %v2522_v28 = vpop.permute.xlu0 %828 }
  0xd9   : > { %813 = vrot.lane.b32.xlu1 %v2386_v60, %s1998_s27  ;;  %v858_v60 = vshrl.u32 %v1967_v53, 16 }
  0xda   : > { %797 = vrot.lane.b32.xlu0 %v2398_v7, %s1998_s27 }
  0xdb   : > { %v890_v0 = vpop.permute.xlu1 %889  ;;  %v863_v38 = vor.u32 %v862_v34, %v858_v60  ;;  %v1971_v60 = vld [vmem:[%s2059_s25 + $0x60] sm:$0xff]  }
  0xdc   : > { %v874_v52 = vpop.permute.xlu0 %873 }
  0xdd   : > { %815 = vrot.lane.b32.xlu1 %v784_v59, %s1998_s27  ;;  %v2549_v54 = vsel %vm511_vm1, %v863_v38, %v867_v8 }
  0xde   : > { %799 = vrot.lane.b32.xlu0 %v760_v27, %s1998_s27 }
  0xdf   : > { %v2532_v63 = vpop.permute.xlu1 %891 }
  0xe0   : > { %v2534_v4 = vpop.permute.xlu0 %875 }
  0xe1   : > { %850 = vrot.lane.b32.xlu1 %v2389_v3, %s1997_s26 }
  0xe2   : > { %834 = vrot.lane.b32.xlu0 %v2401_v45, %s1997_s26 }
  0xe3   : > { %v925_v7 = vpop.permute.xlu1 %924 }
  0xe4   : > { %v909_v47 = vpop.permute.xlu0 %908 }
  0xe5   : > { %852 = vrot.lane.b32.xlu1 %v1967_v53, %s1997_s26 }
  0xe6   : > { %836 = vrot.lane.b32.xlu0 %v2072_v2, %s1997_s26  ;;  %v902_v2 = vrot.slane %v1968_v18, 1  ;;  %v981_v18 = vrot.slane %v979_v30, 1  ;;  %v1021_v30 = vrot.slane %v2573_v25, 1 }
  0xe7   : > { %v2543_v16 = vpop.permute.xlu1 %926 }
  0xe8   : > { %v2545_v17 = vpop.permute.xlu0 %910  ;;  %v982_v8 = vor.u32 %v981_v18, %v977_v46 }
  0xe9   : > { %897 = vrot.lane.b32.xlu1 %v703_v62, %s2000_s29  ;;  %v2560_v62 = vsel %vm736_vm0, %v901_v22, %v902_v2 }
  0xea   : > { %881 = vrot.lane.b32.xlu0 %v607_v5, %s2000_s29  ;;  %v1077_v5 = vsel %vm1055_vm3, %v2107_v39, %v2458_v1  ;;  %v1094_v1 = vsel %vm1088_vm4, %v1061_v37, %v2504_v40 }
  0xeb   : > { %v962_v20 = vpop.permute.xlu1 %961  ;;  %v1110_v36 = vsel %vm1088_vm4, %v1077_v5, %v806_v32  ;;  %v1127_v33 = vsel %vm1121_vm6, %v1094_v1, %v827_v6 }
  0xec   : > { %v946_v42 = vpop.permute.xlu0 %945  ;;  %v1143_v10 = vsel %vm1121_vm6, %v1110_v36, %v843_v35  ;;  %v1160_v19 = vsel %vm1154_vm5, %v1127_v33, %v874_v52  ;;  %v1079_v52 = vsel %vm1055_vm3, %v2158_v11, %v2492_v15  ;;  %v1972_v15 = vld [vmem:[%s2059_s25 + $0x6c] sm:$0xff]   ;;  %s1832_s25 = sshll.u32 %s2899_s18, 8 }
  0xed   : > { %899 = vrot.lane.b32.xlu1 %v2549_v54, %s2000_s29  ;;  %v1176_v32 = vsel %vm1154_vm5, %v1143_v10, %v890_v0  ;;  %v1193_v40 = vsel %vm1187_vm7, %v1160_v19, %v909_v47  ;;  %v1112_v47 = vsel %vm1088_vm4, %v1079_v52, %v2511_v49 }
  0xee   : > { %883 = vrot.lane.b32.xlu0 %v2123_v51, %s2000_s29  ;;  %v1145_v11 = vsel %vm1121_vm6, %v1112_v47, %v2520_v26 }
  0xef   : > { %v964_v55 = vpop.permute.xlu1 %963  ;;  %v1178_v2 = vsel %vm1154_vm5, %v1145_v11, %v2532_v63 }
  0xf0   : > { %v2556_v21 = vpop.permute.xlu0 %947 }
  0xf1   : > { %932 = vrot.lane.b32.xlu1 %v784_v59, %s2001_s30  ;;  %v1209_v59 = vsel %vm1187_vm7, %v1176_v32, %v925_v7 }
  0xf2   : > { %916 = vrot.lane.b32.xlu0 %v760_v27, %s2001_s30  ;;  %v1242_v35 = vsel %vm1220_vm8, %v1209_v59, %v962_v20  ;;  %v986_v20 = vrot.slane %v984_v29, 1 }
  0xf3   : > { %v1009_v24 = vpop.permute.xlu1 %1008 }
  0xf4   : > { %v993_v31 = vpop.permute.xlu0 %992  ;;  %v1275_v0 = vsel %vm1253_vm9, %v1242_v35, %v1009_v24 }
  0xf5   : > { %934 = vrot.lane.b32.xlu1 %v2560_v62, %s2001_s30 }
  0xf6   : > { %918 = vrot.lane.b32.xlu0 %v2085_v12, %s2001_s30  ;;  %s2750_s30 = scalar_lea.vmem %s2893_s5, %s1832_s25 }
  0xf7   : > { %v1011_v39 = vpop.permute.xlu1 %1010 }
  0xf8   : > { %v995_v27 = vpop.permute.xlu0 %994 }
  0xf9   : > { %969 = vrot.lane.b32.xlu1 %v1967_v53, %s2002_s6  ;;  %v1226_v53 = vsel %vm1220_vm8, %v1193_v40, %v946_v42  ;;  %v1063_v42 = vsel %vm1055_vm3, %v2165_v14, %v2494_v61  ;;  %v1211_v14 = vsel %vm1187_vm7, %v1178_v2, %v2543_v16 }
  0xfa   : > { %953 = vrot.lane.b32.xlu0 %v1971_v60, %s2002_s6  ;;  %v1259_v50 = vsel %vm1253_vm9, %v1226_v53, %v993_v31  ;;  %v1096_v49 = vsel %vm1088_vm4, %v1063_v42, %v2514_v41  ;;  %v1244_v5 = vsel %vm1220_vm8, %v1211_v14, %v964_v55  ;;  %v987_v41 = vsel %vm511_vm1, %v982_v8, %v986_v20 }
  0xfb   : > { %v1044_v6 = vpop.permute.xlu1 %1043  ;;  %v1129_v24 = vsel %vm1121_vm6, %v1096_v49, %v2522_v28  ;;  %v1277_v31 = vsel %vm1253_vm9, %v1244_v5, %v1011_v39  ;;  %v1020_v55 = vrot.slane %v2563_v57, 1 }
  0xfc   : > { %v1308_v34 = vsel %vm1286_vm10, %v1275_v0, %v1044_v6  ;;  %v1028_v7 = vpop.permute.xlu0 %1027  ;;  %v1162_v26 = vsel %vm1154_vm5, %v1129_v24, %v2534_v4 }
  0xfd   : > { %971 = vrot.lane.b32.xlu1 %v2563_v57, %s2002_s6  ;;  %1878 = vmatprep.mubr.msk.bf16.mxu1 %vm1339_vm11, %v1308_v34  ;;  %v1292_v38 = vsel %vm1286_vm10, %v1259_v50, %v1028_v7  ;;  %v1195_v63 = vsel %vm1187_vm7, %v1162_v26, %v2545_v17  ;;  %v1022_v37 = vsel %vm736_vm0, %v1020_v55, %v1021_v30 }
  0xfe   : > { %955 = vrot.lane.b32.xlu0 %v1972_v15, %s2002_s6  ;;  %1862 = vmatprep.mubr.msk.bf16.mxu0 %vm1339_vm11, %v1292_v38  ;;  %v1228_v16 = vsel %vm1220_vm8, %v1195_v63, %v2556_v21 }
  0xff   : > { %v729_v22 = vpop.permute.xlu1 %728  ;;  %v1261_v4 = vsel %vm1253_vm9, %v1228_v16, %v995_v27 }
 0x100   : > { %v713_v61 = vpop.permute.xlu0 %712 }
 0x101   : > { %1016 = vrot.lane.b32.xlu1 %v2549_v54, %s2003_s11  ;;  %v1065_v52 = vsel %vm1055_vm3, %v2226_v44, %v713_v61 }
 0x102   : > { %1000 = vrot.lane.b32.xlu0 %v2123_v51, %s2003_s11 }
 0x103   : > { %v1046_v28 = vpop.permute.xlu1 %1045 }
 0x104   : > { %v1310_v54 = vsel %vm1286_vm10, %v1277_v31, %v1046_v28  ;;  %v1030_v36 = vpop.permute.xlu0 %1029 }
 0x105   : > { %1018 = vrot.lane.b32.xlu1 %v987_v41, %s2003_s11  ;;  %1879 = vmatmul.mubr.msk.bf16.gmra.mxu1 %vm1339_vm11, %v1310_v54  ;;  %v1294_v17 = vsel %vm1286_vm10, %v1261_v4, %v1030_v36 }
 0x106   : > { %1002 = vrot.lane.b32.xlu0 %v2118_v48, %s2003_s11  ;;  %1863 = vmatmul.mubr.msk.bf16.gmra.mxu0 %vm1339_vm11, %v1294_v17 }
 0x107   : > { %v731_v51 = vpop.permute.xlu1 %730 }
 0x108   : > { %v715_v21 = vpop.permute.xlu0 %714  ;;  %v1083_v24 = vsel %vm1055_vm3, %v2261_v9, %v731_v51 }
 0x109   : > { %1051 = vrot.lane.b32.xlu1 %v2560_v62, %s2004_s14  ;;  %v1067_v41 = vsel %vm1055_vm3, %v2266_v13, %v715_v21 }
 0x10a   : > { %1035 = vrot.lane.b32.xlu0 %v2085_v12, %s2004_s14 }
 0x10b   : > { %v810_v10 = vpop.permute.xlu1 %809 }
 0x10c   : > { %v794_v39 = vpop.permute.xlu0 %793 }
 0x10d   : > { %1053 = vrot.lane.b32.xlu1 %v1022_v37, %s2004_s14  ;;  %v1098_v47 = vsel %vm1088_vm4, %v1065_v52, %v794_v39 }
 0x10e   : > { %1037 = vrot.lane.b32.xlu0 %v2097_v23, %s2004_s14  ;;  %v1081_v23 = vsel %vm1055_vm3, %v2221_v43, %v729_v22 }
 0x10f   : > { %v812_v48 = vpop.permute.xlu1 %811  ;;  %v1114_v34 = vsel %vm1088_vm4, %v1081_v23, %v810_v10 }
 0x110   : > { %v796_v57 = vpop.permute.xlu0 %795  ;;  %v1116_v26 = vsel %vm1088_vm4, %v1083_v24, %v812_v48 }
 0x111   : > { %v1100_v28 = vsel %vm1088_vm4, %v1067_v41, %v796_v57 }
 0x113   : > { %v847_v25 = vpop.permute.xlu1 %846 }
 0x114   : > { %v831_v1 = vpop.permute.xlu0 %830  ;;  %v1147_v50 = vsel %vm1121_vm6, %v1114_v34, %v847_v25 }
 0x115   : > { %v1131_v8 = vsel %vm1121_vm6, %v1098_v47, %v831_v1 }
 0x117   : > { %v849_v32 = vpop.permute.xlu1 %848 }
 0x118   : > { %v833_v33 = vpop.permute.xlu0 %832  ;;  %v1149_v63 = vsel %vm1121_vm6, %v1116_v26, %v849_v32 }
 0x119   : > { %v1133_v16 = vsel %vm1121_vm6, %v1100_v28, %v833_v33 }
 0x11b   : > { %v894_v59 = vpop.permute.xlu1 %893 }
 0x11c   : > { %v878_v62 = vpop.permute.xlu0 %877  ;;  %v1180_v38 = vsel %vm1154_vm5, %v1147_v50, %v894_v59 }
 0x11d   : > { %v1164_v43 = vsel %vm1154_vm5, %v1131_v8, %v878_v62 }
 0x11f   : > { %v896_v27 = vpop.permute.xlu1 %895 }
 0x120   : > { %v880_v46 = vpop.permute.xlu0 %879  ;;  %v1182_v9 = vsel %vm1154_vm5, %v1149_v63, %v896_v27 }
 0x121   : > { %v1166_v36 = vsel %vm1154_vm5, %v1133_v16, %v880_v46 }
 0x123   : > { %v929_v19 = vpop.permute.xlu1 %928 }
 0x124   : > { %v913_v35 = vpop.permute.xlu0 %912  ;;  %v1213_v20 = vsel %vm1187_vm7, %v1180_v38, %v929_v19 }
 0x125   : > { %v1197_v15 = vsel %vm1187_vm7, %v1164_v43, %v913_v35 }
 0x127   : > { %v931_v12 = vpop.permute.xlu1 %930 }
 0x128   : > { %v915_v18 = vpop.permute.xlu0 %914  ;;  %v1215_v54 = vsel %vm1187_vm7, %v1182_v9, %v931_v12 }
 0x129   : > { %v1199_v13 = vsel %vm1187_vm7, %v1166_v36, %v915_v18 }
 0x12b   : > { %v966_v29 = vpop.permute.xlu1 %965 }
 0x12c   : > { %v950_v40 = vpop.permute.xlu0 %949  ;;  %v1246_v11 = vsel %vm1220_vm8, %v1213_v20, %v966_v29 }
 0x12d   : > { %v1230_v49 = vsel %vm1220_vm8, %v1197_v15, %v950_v40 }
 0x12f   : > { %v968_v0 = vpop.permute.xlu1 %967 }
 0x130   : > { %v952_v60 = vpop.permute.xlu0 %951  ;;  %v1248_v17 = vsel %vm1220_vm8, %v1215_v54, %v968_v0 }
 0x131   : > { %v1232_v51 = vsel %vm1220_vm8, %v1199_v13, %v952_v60 }
 0x133   : > { %v1013_v6 = vpop.permute.xlu1 %1012 }
 0x134   : > { %v997_v53 = vpop.permute.xlu0 %996  ;;  %v1279_v44 = vsel %vm1253_vm9, %v1246_v11, %v1013_v6 }
 0x135   : > { %v1263_v14 = vsel %vm1253_vm9, %v1230_v49, %v997_v53 }
 0x137   : > { %v1015_v7 = vpop.permute.xlu1 %1014 }
 0x138   : > { %v999_v42 = vpop.permute.xlu0 %998  ;;  %v1281_v55 = vsel %vm1253_vm9, %v1248_v17, %v1015_v7 }
 0x139   : > { %v1265_v37 = vsel %vm1253_vm9, %v1232_v51, %v999_v42 }
 0x13b   : > { %v1048_v22 = vpop.permute.xlu1 %1047 }
 0x13c   : > { %v1312_v2 = vsel %vm1286_vm10, %v1279_v44, %v1048_v22  ;;  %v1032_v61 = vpop.permute.xlu0 %1031 }
 0x13d   : > { %1882 = vmatprep.mubr.msk.bf16.mxu1 %vm1339_vm11, %v1312_v2  ;;  %v1296_v5 = vsel %vm1286_vm10, %v1263_v14, %v1032_v61 }
 0x13e   : > { %1866 = vmatprep.mubr.msk.bf16.mxu0 %vm1339_vm11, %v1296_v5 }
 0x13f   : > { %v733_v31 = vpop.permute.xlu1 %732 }
 0x140   : > { %v717_v4 = vpop.permute.xlu0 %716  ;;  %v1085_v50 = vsel %vm1055_vm3, %v2327_v56, %v733_v31 }
 0x141   : > { %v1069_v38 = vsel %vm1055_vm3, %v2333_v58, %v717_v4 }
 0x143   : > { %v1050_v30 = vpop.permute.xlu1 %1049 }
 0x144   : > { %v1314_v21 = vsel %vm1286_vm10, %v1281_v55, %v1050_v30  ;;  %v1034_v10 = vpop.permute.xlu0 %1033 }
 0x145   : > { %1883 = vmatmul.mubr.msk.bf16.gmra.mxu1 %vm1339_vm11, %v1314_v21  ;;  %v1298_v39 = vsel %vm1286_vm10, %v1265_v37, %v1034_v10  ;;  %v2738_v10 = vld [vmem:[%s2891_s3] ss:$0 sm:$0xff] }
 0x146   : > { %1867 = vmatmul.mubr.msk.bf16.gmra.mxu0 %vm1339_vm11, %v1298_v39  ;;  %v2744_v39 = vld [vmem:[%s2892_s4] ss:$0 sm:$0xff] }
 0x147   : > { %v735_v48 = vpop.permute.xlu1 %734 }
 0x148   : > { %v719_v57 = vpop.permute.xlu0 %718  ;;  %v1087_v11 = vsel %vm1055_vm3, %v2389_v3, %v735_v48 }
 0x149   : > { %v1071_v2 = vsel %vm1055_vm3, %v2401_v45, %v719_v57 }
 0x14b   : > { %v814_v25 = vpop.permute.xlu1 %813 }
 0x14c   : > { %v798_v1 = vpop.permute.xlu0 %797  ;;  %v1118_v47 = vsel %vm1088_vm4, %v1085_v50, %v814_v25 }
 0x14d   : > { %v1102_v42 = vsel %vm1088_vm4, %v1069_v38, %v798_v1 }
 0x14f   : > { %v816_v32 = vpop.permute.xlu1 %815 }
 0x150   : > { %v800_v33 = vpop.permute.xlu0 %799  ;;  %v1120_v22 = vsel %vm1088_vm4, %v1087_v11, %v816_v32 }
 0x151   : > { %v1104_v26 = vsel %vm1088_vm4, %v1071_v2, %v800_v33 }
 0x153   : > { %v851_v59 = vpop.permute.xlu1 %850 }
 0x154   : > { %v835_v62 = vpop.permute.xlu0 %834  ;;  %v1151_v8 = vsel %vm1121_vm6, %v1118_v47, %v851_v59 }
 0x155   : > { %v1135_v15 = vsel %vm1121_vm6, %v1102_v42, %v835_v62 }
 0x157   : > { %v853_v27 = vpop.permute.xlu1 %852 }
 0x158   : > { %v837_v46 = vpop.permute.xlu0 %836  ;;  %v1153_v24 = vsel %vm1121_vm6, %v1120_v22, %v853_v27 }
 0x159   : > { %v1137_v31 = vsel %vm1121_vm6, %v1104_v26, %v837_v46 }
 0x15b   : > { %v898_v19 = vpop.permute.xlu1 %897 }
 0x15c   : > { %v882_v35 = vpop.permute.xlu0 %881  ;;  %v1184_v43 = vsel %vm1154_vm5, %v1151_v8, %v898_v19 }
 0x15d   : > { %v1168_v49 = vsel %vm1154_vm5, %v1135_v15, %v882_v35 }
 0x15f   : > { %v900_v12 = vpop.permute.xlu1 %899 }
 0x160   : > { %v884_v18 = vpop.permute.xlu0 %883  ;;  %v1186_v5 = vsel %vm1154_vm5, %v1153_v24, %v900_v12 }
 0x161   : > { %v1170_v16 = vsel %vm1154_vm5, %v1137_v31, %v884_v18 }
 0x163   : > { %v933_v29 = vpop.permute.xlu1 %932 }
 0x164   : > { %v917_v40 = vpop.permute.xlu0 %916  ;;  %v1217_v56 = vsel %vm1187_vm7, %v1184_v43, %v933_v29 }
 0x165   : > { %v1201_v14 = vsel %vm1187_vm7, %v1168_v49, %v917_v40 }
 0x167   : > { %v935_v0 = vpop.permute.xlu1 %934 }
 0x168   : > { %v919_v60 = vpop.permute.xlu0 %918  ;;  %v1219_v28 = vsel %vm1187_vm7, %v1186_v5, %v935_v0 }
 0x169   : > { %v1203_v36 = vsel %vm1187_vm7, %v1170_v16, %v919_v60 }
 0x16b   : > { %v970_v6 = vpop.permute.xlu1 %969 }
 0x16c   : > { %v954_v23 = vpop.permute.xlu0 %953  ;;  %v1250_v58 = vsel %vm1220_vm8, %v1217_v56, %v970_v6 }
 0x16d   : > { %v1234_v41 = vsel %vm1220_vm8, %v1201_v14, %v954_v23 }
 0x16f   : > { %v972_v53 = vpop.permute.xlu1 %971 }
 0x170   : > { %v956_v34 = vpop.permute.xlu0 %955  ;;  %v1252_v54 = vsel %vm1220_vm8, %v1219_v28, %v972_v53 }
 0x171   : > { %v1236_v55 = vsel %vm1220_vm8, %v1203_v36, %v956_v34 }
 0x173   : > { %v1017_v52 = vpop.permute.xlu1 %1016 }
 0x174   : > { %v1001_v7 = vpop.permute.xlu0 %1000  ;;  %v1283_v3 = vsel %vm1253_vm9, %v1250_v58, %v1017_v52 }
 0x175   : > { %v1267_v45 = vsel %vm1253_vm9, %v1234_v41, %v1001_v7 }
 0x177   : > { %v1019_v20 = vpop.permute.xlu1 %1018 }
 0x178   : > { %v1003_v44 = vpop.permute.xlu0 %1002  ;;  %v1285_v17 = vsel %vm1253_vm9, %v1252_v54, %v1019_v20 }
 0x179   : > { %v1269_v51 = vsel %vm1253_vm9, %v1236_v55, %v1003_v44 }
 0x17b   : > { %v1052_v61 = vpop.permute.xlu1 %1051 }
 0x17c   : > { %v1316_v63 = vsel %vm1286_vm10, %v1283_v3, %v1052_v61  ;;  %v1036_v9 = vpop.permute.xlu0 %1035 }
 0x17d   : > { %1886 = vmatprep.mubr.msk.bf16.mxu1 %vm1339_vm11, %v1316_v63  ;;  %v1300_v4 = vsel %vm1286_vm10, %v1267_v45, %v1036_v9 }
 0x17e   : > { %1870 = vmatprep.mubr.msk.bf16.mxu0 %vm1339_vm11, %v1300_v4 }
 0x17f   : > { %v1054_v13 = vpop.permute.xlu1 %1053 }
 0x180   : > { %v1318_v30 = vsel %vm1286_vm10, %v1285_v17, %v1054_v13  ;;  %v1038_v21 = vpop.permute.xlu0 %1037 }
 0x181   : > { %1887 = vmatmul.mubr.msk.bf16.gmra.mxu1 %vm1339_vm11, %v1318_v30  ;;  %v1302_v37 = vsel %vm1286_vm10, %v1269_v51, %v1038_v21 }
 0x182   : > { %1871 = vmatmul.mubr.msk.bf16.gmra.mxu0 %vm1339_vm11, %v1302_v37 }
 0x185   : > { %v1876_v48 = vpop.f32.mrf.mxu1 }
 0x186   : > { %v1562_v57 = vmul.f32 %v1876_v48, %v2738_v10  ;;  %v1860_v25 = vpop.f32.mrf.mxu0 }
 0x187   : > { %v1474_v1 = vpop.f32.mrf.mxu1  ;;  %v1546_v32 = vmul.f32 %v1860_v25, %v2738_v10 }
 0x188   : > { %v1601_v33 = vadd.f32 %v2744_v39, %v1562_v57  ;;  %v1560_v59 = vmul.f32 %v2738_v10, %v1474_v1  ;;  %v1410_v62 = vpop.f32.mrf.mxu0 }
 0x189   : > { %v1877_v27 = vpop.f32.mrf.mxu1  ;;  %v1585_v46 = vadd.f32 %v2744_v39, %v1546_v32  ;;  %v1544_v19 = vmul.f32 %v2738_v10, %v1410_v62 }
 0x18a   : > { %1633 = vst.msk [vmem:[%s2750_s30 + $0x90] sm:$0xff] %vm1088_vm4, %v1601_v33  ;;  %v1599_v35 = vadd.f32 %v2744_v39, %v1560_v59  ;;  %v1563_v12 = vmul.f32 %v1877_v27, %v2738_v10  ;;  %v1861_v18 = vpop.f32.mrf.mxu0 }
 0x18b   : > { %v1477_v29 = vpop.f32.mrf.mxu1  ;;  %1617 = vst.msk [vmem:[%s2750_s30 + $0x10] sm:$0xff] %vm1088_vm4, %v1585_v46  ;;  %v1583_v40 = vadd.f32 %v2744_v39, %v1544_v19  ;;  %v1547_v0 = vmul.f32 %v1861_v18, %v2738_v10 }
 0x18c   : > { %1631 = vst.msk [vmem:[%s2750_s30 + $0x80] sm:$0xff] %vm1088_vm4, %v1599_v35  ;;  %v1602_v60 = vadd.f32 %v2744_v39, %v1563_v12  ;;  %v1561_v6 = vmul.f32 %v2738_v10, %v1477_v29  ;;  %v1413_v23 = vpop.f32.mrf.mxu0 }
 0x18d   : > { %1615 = vst.msk [vmem:[%s2750_s30] sm:$0xff] %vm1088_vm4, %v1583_v40  ;;  %v1586_v53 = vadd.f32 %v2744_v39, %v1547_v0  ;;  %v1545_v34 = vmul.f32 %v2738_v10, %v1413_v23 }
 0x18e   : > { %1634 = vst.msk [vmem:[%s2750_s30 + $0x98] sm:$0xff] %vm1088_vm4, %v1602_v60  ;;  %v1600_v52 = vadd.f32 %v2744_v39, %v1561_v6 }
 0x18f   : > { %1618 = vst.msk [vmem:[%s2750_s30 + $0x18] sm:$0xff] %vm1088_vm4, %v1586_v53  ;;  %v1584_v50 = vadd.f32 %v2744_v39, %v1545_v34 }
 0x190   : > { %1632 = vst.msk [vmem:[%s2750_s30 + $0x88] sm:$0xff] %vm1088_vm4, %v1600_v52 }
 0x191   : > { %1616 = vst.msk [vmem:[%s2750_s30 + $0x8] sm:$0xff] %vm1088_vm4, %v1584_v50 }
 0x1c5   : > { %v1880_v7 = vpop.f32.mrf.mxu1 }
 0x1c6   : > { %v1566_v47 = vmul.f32 %v1880_v7, %v2738_v10  ;;  %v1864_v38 = vpop.f32.mrf.mxu0 }
 0x1c7   : > { %v1490_v8 = vpop.f32.mrf.mxu1  ;;  %v1550_v20 = vmul.f32 %v1864_v38, %v2738_v10 }
 0x1c8   : > { %v1605_v42 = vadd.f32 %v2744_v39, %v1566_v47  ;;  %v1564_v43 = vmul.f32 %v2738_v10, %v1490_v8  ;;  %v1426_v11 = vpop.f32.mrf.mxu0 }
 0x1c9   : > { %v1881_v15 = vpop.f32.mrf.mxu1  ;;  %v1589_v56 = vadd.f32 %v2744_v39, %v1550_v20  ;;  %v1548_v44 = vmul.f32 %v2738_v10, %v1426_v11 }
 0x1ca   : > { %1637 = vst.msk [vmem:[%s2750_s30 + $0xb0] sm:$0xff] %vm1088_vm4, %v1605_v42  ;;  %v1603_v22 = vadd.f32 %v2744_v39, %v1564_v43  ;;  %v1567_v49 = vmul.f32 %v1881_v15, %v2738_v10  ;;  %v1865_v58 = vpop.f32.mrf.mxu0 }
 0x1cb   : > { %v1493_v2 = vpop.f32.mrf.mxu1  ;;  %1621 = vst.msk [vmem:[%s2750_s30 + $0x30] sm:$0xff] %vm1088_vm4, %v1589_v56  ;;  %v1587_v24 = vadd.f32 %v2744_v39, %v1548_v44  ;;  %v1551_v14 = vmul.f32 %v1865_v58, %v2738_v10 }
 0x1cc   : > { %1635 = vst.msk [vmem:[%s2750_s30 + $0xa0] sm:$0xff] %vm1088_vm4, %v1603_v22  ;;  %v1606_v3 = vadd.f32 %v2744_v39, %v1567_v49  ;;  %v1565_v61 = vmul.f32 %v2738_v10, %v1493_v2  ;;  %v1429_v26 = vpop.f32.mrf.mxu0 }
 0x1cd   : > { %1619 = vst.msk [vmem:[%s2750_s30 + $0x20] sm:$0xff] %vm1088_vm4, %v1587_v24  ;;  %v1590_v5 = vadd.f32 %v2744_v39, %v1551_v14  ;;  %v1549_v41 = vmul.f32 %v2738_v10, %v1429_v26 }
 0x1ce   : > { %1638 = vst.msk [vmem:[%s2750_s30 + $0xb8] sm:$0xff] %vm1088_vm4, %v1606_v3  ;;  %v1604_v63 = vadd.f32 %v2744_v39, %v1565_v61 }
 0x1cf   : > { %1622 = vst.msk [vmem:[%s2750_s30 + $0x38] sm:$0xff] %vm1088_vm4, %v1590_v5  ;;  %v1588_v31 = vadd.f32 %v2744_v39, %v1549_v41 }
 0x1d0   : > { %1636 = vst.msk [vmem:[%s2750_s30 + $0xa8] sm:$0xff] %vm1088_vm4, %v1604_v63 }
 0x1d1   : > { %1620 = vst.msk [vmem:[%s2750_s30 + $0x28] sm:$0xff] %vm1088_vm4, %v1588_v31 }
 0x205   : > { %v1884_v28 = vpop.f32.mrf.mxu1 }
 0x206   : > { %v1570_v45 = vmul.f32 %v1884_v28, %v2738_v10  ;;  %v1868_v9 = vpop.f32.mrf.mxu0 }
 0x207   : > { %v1506_v16 = vpop.f32.mrf.mxu1  ;;  %v1554_v54 = vmul.f32 %v1868_v9, %v2738_v10 }
 0x208   : > { %v1609_v4 = vadd.f32 %v2744_v39, %v1570_v45  ;;  %v1568_v36 = vmul.f32 %v2738_v10, %v1506_v16  ;;  %v1442_v17 = vpop.f32.mrf.mxu0 }
 0x209   : > { %v1885_v13 = vpop.f32.mrf.mxu1  ;;  %v1593_v55 = vadd.f32 %v2744_v39, %v1554_v54  ;;  %v1552_v30 = vmul.f32 %v2738_v10, %v1442_v17 }
 0x20a   : > { %1641 = vst.msk [vmem:[%s2750_s30 + $0xd0] sm:$0xff] %vm1088_vm4, %v1609_v4  ;;  %v1607_v51 = vadd.f32 %v2744_v39, %v1568_v36  ;;  %v1571_v21 = vmul.f32 %v1885_v13, %v2738_v10  ;;  %v1869_v37 = vpop.f32.mrf.mxu0 }
 0x20b   : > { %v1509_v48 = vpop.f32.mrf.mxu1  ;;  %1625 = vst.msk [vmem:[%s2750_s30 + $0x50] sm:$0xff] %vm1088_vm4, %v1593_v55  ;;  %v1591_v57 = vadd.f32 %v2744_v39, %v1552_v30  ;;  %v1555_v25 = vmul.f32 %v1869_v37, %v2738_v10 }
 0x20c   : > { %1639 = vst.msk [vmem:[%s2750_s30 + $0xc0] sm:$0xff] %vm1088_vm4, %v1607_v51  ;;  %v1610_v1 = vadd.f32 %v2744_v39, %v1571_v21  ;;  %v1569_v32 = vmul.f32 %v2738_v10, %v1509_v48  ;;  %v1445_v33 = vpop.f32.mrf.mxu0 }
 0x20d   : > { %1623 = vst.msk [vmem:[%s2750_s30 + $0x40] sm:$0xff] %vm1088_vm4, %v1591_v57  ;;  %v1594_v59 = vadd.f32 %v2744_v39, %v1555_v25  ;;  %v1553_v62 = vmul.f32 %v2738_v10, %v1445_v33 }
 0x20e   : > { %1642 = vst.msk [vmem:[%s2750_s30 + $0xd8] sm:$0xff] %vm1088_vm4, %v1610_v1  ;;  %v1608_v27 = vadd.f32 %v2744_v39, %v1569_v32 }
 0x20f   : > { %1626 = vst.msk [vmem:[%s2750_s30 + $0x58] sm:$0xff] %vm1088_vm4, %v1594_v59  ;;  %v1592_v46 = vadd.f32 %v2744_v39, %v1553_v62 }
 0x210   : > { %1640 = vst.msk [vmem:[%s2750_s30 + $0xc8] sm:$0xff] %vm1088_vm4, %v1608_v27 }
 0x211   : > { %1624 = vst.msk [vmem:[%s2750_s30 + $0x48] sm:$0xff] %vm1088_vm4, %v1592_v46 }
 0x241   : > { %v1888_v19 = vpop.f32.mrf.mxu1 }
 0x242   : > { %v1574_v35 = vmul.f32 %v1888_v19, %v2738_v10  ;;  %v1872_v12 = vpop.f32.mrf.mxu0 }
 0x243   : > { %v1522_v18 = vpop.f32.mrf.mxu1  ;;  %v1558_v29 = vmul.f32 %v1872_v12, %v2738_v10 }
 0x244   : > { %v1613_v40 = vadd.f32 %v2744_v39, %v1574_v35  ;;  %v1572_v0 = vmul.f32 %v2738_v10, %v1522_v18  ;;  %v1458_v60 = vpop.f32.mrf.mxu0 }
 0x245   : > { %v1889_v6 = vpop.f32.mrf.mxu1  ;;  %v1597_v23 = vadd.f32 %v2744_v39, %v1558_v29  ;;  %v1556_v53 = vmul.f32 %v2738_v10, %v1458_v60 }
 0x246   : > { %1645 = vst.msk [vmem:[%s2750_s30 + $0xf0] sm:$0xff] %vm1088_vm4, %v1613_v40  ;;  %v1611_v34 = vadd.f32 %v2744_v39, %v1572_v0  ;;  %v1575_v52 = vmul.f32 %v1889_v6, %v2738_v10  ;;  %v1873_v50 = vpop.f32.mrf.mxu0 }
 0x247   : > { %v1525_v7 = vpop.f32.mrf.mxu1  ;;  %1629 = vst.msk [vmem:[%s2750_s30 + $0x70] sm:$0xff] %vm1088_vm4, %v1597_v23  ;;  %v1595_v47 = vadd.f32 %v2744_v39, %v1556_v53  ;;  %v1559_v38 = vmul.f32 %v1873_v50, %v2738_v10 }
 0x248   : > { %1643 = vst.msk [vmem:[%s2750_s30 + $0xe0] sm:$0xff] %vm1088_vm4, %v1611_v34  ;;  %v1614_v8 = vadd.f32 %v2744_v39, %v1575_v52  ;;  %v1573_v20 = vmul.f32 %v2738_v10, %v1525_v7  ;;  %v1461_v42 = vpop.f32.mrf.mxu0 }
 0x249   : > { %1627 = vst.msk [vmem:[%s2750_s30 + $0x60] sm:$0xff] %vm1088_vm4, %v1595_v47  ;;  %v1598_v43 = vadd.f32 %v2744_v39, %v1559_v38  ;;  %v1557_v11 = vmul.f32 %v2738_v10, %v1461_v42 }
 0x24a   : > { %1646 = vst.msk [vmem:[%s2750_s30 + $0xf8] sm:$0xff] %vm1088_vm4, %v1614_v8  ;;  %v1612_v15 = vadd.f32 %v2744_v39, %v1573_v20 }
 0x24b   : > { %1630 = vst.msk [vmem:[%s2750_s30 + $0x78] sm:$0xff] %vm1088_vm4, %v1598_v43  ;;  %v1596_v56 = vadd.f32 %v2744_v39, %v1557_v11 }
 0x24c   : > { %1644 = vst.msk [vmem:[%s2750_s30 + $0xe8] sm:$0xff] %vm1088_vm4, %v1612_v15 }
 0x24d   : > { %1628 = vst.msk [vmem:[%s2750_s30 + $0x68] sm:$0xff] %vm1088_vm4, %v1596_v56 }
 0x24e PF: > { %s15_s20 = sadd.s32 1, %s1995_s20   ;;  %s2894_s18 = smov %s1991_s19 }
 0x24f   : > { %p12_p5 = scmp.ge.s32.totalorder %s15_s20, 4   ;;  %s2895_s19 = smov %s2897_s21 }
 0x251   :  { %14 = sbr.rel (!%p12_p5) target bundleno = 2 (0x2), region = 73 }

</bundles_post_ra>
